<compile_context>
chip_gen: v7x
topology: tpu7x:2x2x1
jax: 0.10.0
libtpu: 0.0.40
codegen_flags: <defaults>
</compile_context>

<pallas_src>
import functools

import jax
import jax.numpy as jnp
from jax import lax
from jax.experimental import pallas as pl
from jax.experimental.pallas import tpu as pltpu

DIM = 256
HID = 256
OUT_PRE_POOL = 513
OUT_POOLED = 256  # floor((513 - 3) / 2) + 1


def _layer_norm(x, eps=1e-5):
    """One-pass, affine-free LayerNorm (gamma/beta are folded into the fc)."""
    n = x.shape[-1]
    inv_n = 1.0 / n
    s1 = jnp.sum(x, axis=-1, keepdims=True)
    s2 = jnp.sum(x * x, axis=-1, keepdims=True)
    mu = s1 * inv_n
    var = jnp.maximum(s2 * inv_n - mu * mu, 0.0)   # per-row only, negligible
    inv = lax.rsqrt(var + eps)
    return (x - mu) * inv


def _elu(x):
    # alpha = 1.0.  The inf produced by exp() in the dead branch is discarded
    # by the select; no clamp needed.
    return jnp.where(x > 0.0, x, jnp.exp(x) - 1.0)


def _avg_pool_matrix():
    """AvgPool1d(kernel=3, stride=2) over 513 positions as a (513, 256) matrix."""
    rows = jnp.arange(OUT_PRE_POOL)[:, None]
    cols = jnp.arange(OUT_POOLED)[None, :]
    mask = (rows >= 2 * cols) & (rows <= 2 * cols + 2)
    return mask.astype(jnp.float32) / 3.0


def decoder_a_kernel(
    h_ref,
    fc1w_ref, fc1b_ref,
    fc2w_ref, fc2b_ref,
    fc3w_ref, fc3b_ref,
    out_ref,
):
    x = h_ref[...].astype(jnp.float32)

    # block 1: LN (affine folded into fc1) -> fc1 -> ELU
    x = _layer_norm(x)
    x = jnp.dot(x.astype(jnp.bfloat16), fc1w_ref[...],
                preferred_element_type=jnp.float32) + fc1b_ref[...]
    x = _elu(x)

    # block 2: LN -> fc2 -> ELU
    x = _layer_norm(x)
    x = jnp.dot(x.astype(jnp.bfloat16), fc2w_ref[...],
                preferred_element_type=jnp.float32) + fc2b_ref[...]
    x = _elu(x)

    # block 3: LN -> (fc3 with LN affine + AvgPool folded in) -> softmax
    x = _layer_norm(x)
    logits = jnp.dot(x.astype(jnp.bfloat16), fc3w_ref[...],
                     preferred_element_type=jnp.float32) + fc3b_ref[...]

    m = jnp.max(logits, axis=-1, keepdims=True)
    e = jnp.exp(logits - m)
    denom = jnp.sum(e, axis=-1, keepdims=True)
    inv = 1.0 / denom                      # exact; per-row cost only
    out_ref[...] = (e * inv).astype(out_ref.dtype)


def _choose_tb(B):
    """This kernel is elementwise/HBM/step-overhead bound, not MXU bound.

    Use large row tiles to amortize the ~0.35 us per-grid-step overhead, but
    keep >=4 grid steps when the batch allows so v7x's two TensorCores each
    get >=2 pipelined steps.  Multiples of 16 keep bf16 I/O blocks clean.
    """
    target = -(-B // 4)                       # ceil(B / 4)
    tb = -(-target // 16) * 16                # round up to multiple of 16
    return min(1024, max(16, tb))


_VMEM_SPEC = pl.BlockSpec(memory_space=pltpu.MemorySpace.VMEM)


@functools.partial(jax.jit, static_argnames=("tb", "out_dtype"))
def _decoder_a_impl(h, params, tb, out_dtype):
    B, D = h.shape
    assert D == DIM and tb % 16 == 0

    (ln1w, ln1b, fc1w, fc1b,
     ln2w, ln2b, fc2w, fc2b,
     ln3w, ln3b, fc3w, fc3b) = params

    # --- trace-time weight folding (plain XLA, outside the kernel) ---------
    # LN affine fold:  LN_aff(x) @ W + b == LN_plain(x) @ (diag(g) @ W) + (b + beta @ W)
    fc1w_f = (fc1w * ln1w.reshape(DIM, 1)).astype(jnp.bfloat16)
    fc1b_f = fc1b + ln1b @ fc1w
    fc2w_f = (fc2w * ln2w.reshape(HID, 1)).astype(jnp.bfloat16)
    fc2b_f = fc2b + ln2b @ fc2w
    # fc3: fold LN3 affine AND the AvgPool1d(3,2) matrix.
    poolm = _avg_pool_matrix()
    fc3w_f = ((fc3w * ln3w.reshape(HID, 1)) @ poolm).astype(jnp.bfloat16)
    fc3b_f = (fc3b + ln3b @ fc3w) @ poolm

    weight_args = (fc1w_f, fc1b_f, fc2w_f, fc2b_f, fc3w_f, fc3b_f)

    in_specs = [pl.BlockSpec((tb, DIM), lambda i: (i, 0))]
    in_specs += [_VMEM_SPEC] * len(weight_args)

    # No pad/slice: partial last block is masked by Pallas (rows never mix,
    # so garbage in out-of-bounds input rows cannot affect valid rows and is
    # dropped by the masked output store).
    grid = (pl.cdiv(B, tb),)

    out = pl.pallas_call(
        decoder_a_kernel,
        out_shape=jax.ShapeDtypeStruct((B, OUT_POOLED), out_dtype),
        grid_spec=pltpu.PrefetchScalarGridSpec(
            num_scalar_prefetch=0,
            grid=grid,
            in_specs=in_specs,
            out_specs=pl.BlockSpec((tb, OUT_POOLED), lambda i: (i, 0)),
        ),
        compiler_params=pltpu.CompilerParams(
            dimension_semantics=("parallel",),
            # Big tiles need headroom over v5e's 16 MiB scoped default; 32 MiB
            # is within every generation's physical VMEM.
            vmem_limit_bytes=(32 * 1024 * 1024 if tb >= 512 else None),
        ),
    )(h, *weight_args)

    return out


def decoder_a(h, params, tb=None, out_dtype=None):
    B = h.shape[0]
    if tb is None:
        tb = _choose_tb(B)
    tb = max(16, -(-tb // 16) * 16)
    if out_dtype is None:
        out_dtype = h.dtype          # bf16 in -> bf16 out; no wrapper casts
    return _decoder_a_impl(h, tuple(params), tb, jnp.dtype(out_dtype))


def init_params(key):
    """Parameter init with PyTorch Linear-like scales.  LN gamma/beta are
    randomized (instead of the 1/0 defaults) so the affine-fold path is
    actually exercised by the correctness check."""
    ks = jax.random.split(key, 6)

    def linear(k, fan_in, fan_out):
        bound = 1.0 / (fan_in ** 0.5)
        kw, kb = jax.random.split(k)
        # weight stored already transposed: (in, out); kernel does x @ W
        w = jax.random.uniform(kw, (fan_in, fan_out), jnp.float32, -bound, bound)
        b = jax.random.uniform(kb, (1, fan_out), jnp.float32, -bound, bound)
        return w, b

    def ln_params(k, dim):
        kw, kb = jax.random.split(k)
        w = 1.0 + 0.1 * jax.random.normal(kw, (1, dim), jnp.float32)
        b = 0.1 * jax.random.normal(kb, (1, dim), jnp.float32)
        return w, b

    ln1w, ln1b = ln_params(ks[0], DIM)
    fc1w, fc1b = linear(ks[1], DIM, HID)
    ln2w, ln2b = ln_params(ks[2], HID)
    fc2w, fc2b = linear(ks[3], HID, HID)
    ln3w, ln3b = ln_params(ks[4], HID)
    fc3w, fc3b = linear(ks[5], HID, OUT_PRE_POOL)

    return (ln1w, ln1b, fc1w, fc1b, ln2w, ln2b, fc2w, fc2b,
            ln3w, ln3b, fc3w, fc3b)


def decoder_a_reference(h, params):
    """Pure-JAX f32 reference of the PyTorch forward (no folds, affine LN)."""
    (ln1w, ln1b, fc1w, fc1b, ln2w, ln2b, fc2w, fc2b,
     ln3w, ln3b, fc3w, fc3b) = params

    def ln(x, w, b, eps=1e-5):
        mu = jnp.mean(x, axis=-1, keepdims=True)
        var = jnp.mean((x - mu) ** 2, axis=-1, keepdims=True)
        return (x - mu) * lax.rsqrt(var + eps) * w + b

    x = h.astype(jnp.float32)
    x = jax.nn.elu(ln(x, ln1w, ln1b) @ fc1w + fc1b)
    x = jax.nn.elu(ln(x, ln2w, ln2b) @ fc2w + fc2b)
    x = ln(x, ln3w, ln3b) @ fc3w + fc3b
    x = x @ _avg_pool_matrix()
    return jax.nn.softmax(x, axis=1)


if __name__ == "__main__":
    key = jax.random.PRNGKey(0)
    k_h, k_p = jax.random.split(key)

    # DIM=256 is fixed by the module; B=20 exercises the masked partial last
    # block (tb=16, grid=2, 4 valid rows in the final tile).
    B = 20
    h = jax.random.normal(k_h, (B, DIM), jnp.float32)
    params = init_params(k_p)

    out = jax.block_until_ready(decoder_a(h, params))
    ref = decoder_a_reference(h, params)

    assert out.shape == (B, OUT_POOLED)
    assert out.dtype == jnp.float32
    # Exact reciprocal in the softmax -> rows sum to 1 to FP precision.
    assert jnp.allclose(jnp.sum(out, axis=1), 1.0, atol=1e-4)
    # bf16 MXU operands + folded LN-affine/pool -> loose comparison to the
    # exact f32 reference of the module.
    max_err = float(jnp.max(jnp.abs(out - ref)))
    assert max_err < 2e-3, max_err

    # bf16 I/O path (halves the batch-scaled HBM streams) — smoke check.
    out_bf = jax.block_until_ready(decoder_a(h.astype(jnp.bfloat16), params))
    assert out_bf.shape == (B, OUT_POOLED) and out_bf.dtype == jnp.bfloat16
    assert jnp.allclose(jnp.sum(out_bf.astype(jnp.float32), axis=1), 1.0,
                        atol=3e-2)

    print("KERNEL_OK")
</pallas_src>

<mosaic_0001>
module attributes {stable_mosaic.version = 11 : i64} {
  func.func @decoder_a_kernel(%arg0: i32, %arg1: memref<16x256xf32, #tpu.memory_space<vmem>>, %arg2: memref<256x256xbf16, #tpu.memory_space<vmem>>, %arg3: memref<1x256xf32, #tpu.memory_space<vmem>>, %arg4: memref<256x256xbf16, #tpu.memory_space<vmem>>, %arg5: memref<1x256xf32, #tpu.memory_space<vmem>>, %arg6: memref<256x256xbf16, #tpu.memory_space<vmem>>, %arg7: memref<1x256xf32, #tpu.memory_space<vmem>>, %arg8: memref<16x256xf32, #tpu.memory_space<vmem>>) attributes {dimension_semantics = [#tpu.dimension_semantics<parallel>], iteration_bounds = array<i64: 2>, scalar_prefetch = 0 : i64, scratch_operands = 0 : i64, tpu.core_type = #tpu.core_type<tc>, window_params = [{transform_indices = @transform_0, window_bounds = array<i64: 16, 256>}, {pipeline_mode = #tpu.pipeline_mode<synchronous>, transform_indices = @transform_1, window_bounds = array<i64: 256, 256>}, {pipeline_mode = #tpu.pipeline_mode<synchronous>, transform_indices = @transform_2, window_bounds = array<i64: 1, 256>}, {pipeline_mode = #tpu.pipeline_mode<synchronous>, transform_indices = @transform_3, window_bounds = array<i64: 256, 256>}, {pipeline_mode = #tpu.pipeline_mode<synchronous>, transform_indices = @transform_4, window_bounds = array<i64: 1, 256>}, {pipeline_mode = #tpu.pipeline_mode<synchronous>, transform_indices = @transform_5, window_bounds = array<i64: 256, 256>}, {pipeline_mode = #tpu.pipeline_mode<synchronous>, transform_indices = @transform_6, window_bounds = array<i64: 1, 256>}, {transform_indices = @transform_7, window_bounds = array<i64: 16, 256>}]} {
    %c0 = arith.constant 0 : index
    %c0_0 = arith.constant 0 : index
    %0 = vector.load %arg1[%c0, %c0_0] : memref<16x256xf32, #tpu.memory_space<vmem>>, vector<16x256xf32>
    %cst = arith.constant dense<0.000000e+00> : vector<16xf32>
    %1 = vector.multi_reduction <add>, %0, %cst [1] : vector<16x256xf32> to vector<16xf32>
    %2 = vector.shape_cast %1 : vector<16xf32> to vector<16x1xf32>
    %3 = arith.mulf %0, %0 : vector<16x256xf32>
    %cst_1 = arith.constant dense<0.000000e+00> : vector<16xf32>
    %4 = vector.multi_reduction <add>, %3, %cst_1 [1] : vector<16x256xf32> to vector<16xf32>
    %5 = vector.shape_cast %4 : vector<16xf32> to vector<16x1xf32>
    %cst_2 = arith.constant 3.906250e-03 : f32
    %6 = vector.broadcast %cst_2 : f32 to vector<16x1xf32>
    %7 = arith.mulf %2, %6 : vector<16x1xf32>
    %cst_3 = arith.constant 3.906250e-03 : f32
    %8 = vector.broadcast %cst_3 : f32 to vector<16x1xf32>
    %9 = arith.mulf %5, %8 : vector<16x1xf32>
    %10 = arith.mulf %7, %7 : vector<16x1xf32>
    %11 = arith.subf %9, %10 : vector<16x1xf32>
    %cst_4 = arith.constant 0.000000e+00 : f32
    %12 = vector.broadcast %cst_4 : f32 to vector<16x1xf32>
    %13 = arith.maximumf %11, %12 : vector<16x1xf32>
    %cst_5 = arith.constant 9.99999974E-6 : f32
    %14 = vector.broadcast %cst_5 : f32 to vector<16x1xf32>
    %15 = arith.addf %13, %14 : vector<16x1xf32>
    %16 = math.rsqrt %15 : vector<16x1xf32>
    %17 = vector.broadcast %7 : vector<16x1xf32> to vector<16x256xf32>
    %18 = arith.subf %0, %17 : vector<16x256xf32>
    %19 = vector.broadcast %16 : vector<16x1xf32> to vector<16x256xf32>
    %20 = arith.mulf %18, %19 : vector<16x256xf32>
    %21 = arith.truncf %20 : vector<16x256xf32> to vector<16x256xbf16>
    %c0_6 = arith.constant 0 : index
    %c0_7 = arith.constant 0 : index
    %22 = vector.load %arg2[%c0_6, %c0_7] : memref<256x256xbf16, #tpu.memory_space<vmem>>, vector<256x256xbf16>
    %cst_8 = arith.constant dense<0.000000e+00> : vector<16x256xf32>
    %23 = tpu.matmul %21, %22, %cst_8 {dimension_numbers = #tpu.dot_dimension_numbers<[1], [0], [0], [1], [0, 0, 1, 1], [], []>} : vector<16x256xbf16>, vector<256x256xbf16>, vector<16x256xf32> -> vector<16x256xf32>
    %c0_9 = arith.constant 0 : index
    %c0_10 = arith.constant 0 : index
    %24 = vector.load %arg3[%c0_9, %c0_10] : memref<1x256xf32, #tpu.memory_space<vmem>>, vector<1x256xf32>
    %25 = vector.broadcast %24 : vector<1x256xf32> to vector<16x256xf32>
    %26 = arith.addf %23, %25 : vector<16x256xf32>
    %cst_11 = arith.constant 0.000000e+00 : f32
    %27 = vector.broadcast %cst_11 : f32 to vector<16x256xf32>
    %28 = arith.cmpf ogt, %26, %27 : vector<16x256xf32>
    %29 = math.exp %26 : vector<16x256xf32>
    %cst_12 = arith.constant 1.000000e+00 : f32
    %30 = vector.broadcast %cst_12 : f32 to vector<16x256xf32>
    %31 = arith.subf %29, %30 : vector<16x256xf32>
    %32 = arith.select %28, %26, %31 : vector<16x256xi1>, vector<16x256xf32>
    %cst_13 = arith.constant dense<0.000000e+00> : vector<16xf32>
    %33 = vector.multi_reduction <add>, %32, %cst_13 [1] : vector<16x256xf32> to vector<16xf32>
    %34 = vector.shape_cast %33 : vector<16xf32> to vector<16x1xf32>
    %35 = arith.mulf %32, %32 : vector<16x256xf32>
    %cst_14 = arith.constant dense<0.000000e+00> : vector<16xf32>
    %36 = vector.multi_reduction <add>, %35, %cst_14 [1] : vector<16x256xf32> to vector<16xf32>
    %37 = vector.shape_cast %36 : vector<16xf32> to vector<16x1xf32>
    %cst_15 = arith.constant 3.906250e-03 : f32
    %38 = vector.broadcast %cst_15 : f32 to vector<16x1xf32>
    %39 = arith.mulf %34, %38 : vector<16x1xf32>
    %cst_16 = arith.constant 3.906250e-03 : f32
    %40 = vector.broadcast %cst_16 : f32 to vector<16x1xf32>
    %41 = arith.mulf %37, %40 : vector<16x1xf32>
    %42 = arith.mulf %39, %39 : vector<16x1xf32>
    %43 = arith.subf %41, %42 : vector<16x1xf32>
    %cst_17 = arith.constant 0.000000e+00 : f32
    %44 = vector.broadcast %cst_17 : f32 to vector<16x1xf32>
    %45 = arith.maximumf %43, %44 : vector<16x1xf32>
    %cst_18 = arith.constant 9.99999974E-6 : f32
    %46 = vector.broadcast %cst_18 : f32 to vector<16x1xf32>
    %47 = arith.addf %45, %46 : vector<16x1xf32>
    %48 = math.rsqrt %47 : vector<16x1xf32>
    %49 = vector.broadcast %39 : vector<16x1xf32> to vector<16x256xf32>
    %50 = arith.subf %32, %49 : vector<16x256xf32>
    %51 = vector.broadcast %48 : vector<16x1xf32> to vector<16x256xf32>
    %52 = arith.mulf %50, %51 : vector<16x256xf32>
    %53 = arith.truncf %52 : vector<16x256xf32> to vector<16x256xbf16>
    %c0_19 = arith.constant 0 : index
    %c0_20 = arith.constant 0 : index
    %54 = vector.load %arg4[%c0_19, %c0_20] : memref<256x256xbf16, #tpu.memory_space<vmem>>, vector<256x256xbf16>
    %cst_21 = arith.constant dense<0.000000e+00> : vector<16x256xf32>
    %55 = tpu.matmul %53, %54, %cst_21 {dimension_numbers = #tpu.dot_dimension_numbers<[1], [0], [0], [1], [0, 0, 1, 1], [], []>} : vector<16x256xbf16>, vector<256x256xbf16>, vector<16x256xf32> -> vector<16x256xf32>
    %c0_22 = arith.constant 0 : index
    %c0_23 = arith.constant 0 : index
    %56 = vector.load %arg5[%c0_22, %c0_23] : memref<1x256xf32, #tpu.memory_space<vmem>>, vector<1x256xf32>
    %57 = vector.broadcast %56 : vector<1x256xf32> to vector<16x256xf32>
    %58 = arith.addf %55, %57 : vector<16x256xf32>
    %cst_24 = arith.constant 0.000000e+00 : f32
    %59 = vector.broadcast %cst_24 : f32 to vector<16x256xf32>
    %60 = arith.cmpf ogt, %58, %59 : vector<16x256xf32>
    %61 = math.exp %58 : vector<16x256xf32>
    %cst_25 = arith.constant 1.000000e+00 : f32
    %62 = vector.broadcast %cst_25 : f32 to vector<16x256xf32>
    %63 = arith.subf %61, %62 : vector<16x256xf32>
    %64 = arith.select %60, %58, %63 : vector<16x256xi1>, vector<16x256xf32>
    %cst_26 = arith.constant dense<0.000000e+00> : vector<16xf32>
    %65 = vector.multi_reduction <add>, %64, %cst_26 [1] : vector<16x256xf32> to vector<16xf32>
    %66 = vector.shape_cast %65 : vector<16xf32> to vector<16x1xf32>
    %67 = arith.mulf %64, %64 : vector<16x256xf32>
    %cst_27 = arith.constant dense<0.000000e+00> : vector<16xf32>
    %68 = vector.multi_reduction <add>, %67, %cst_27 [1] : vector<16x256xf32> to vector<16xf32>
    %69 = vector.shape_cast %68 : vector<16xf32> to vector<16x1xf32>
    %cst_28 = arith.constant 3.906250e-03 : f32
    %70 = vector.broadcast %cst_28 : f32 to vector<16x1xf32>
    %71 = arith.mulf %66, %70 : vector<16x1xf32>
    %cst_29 = arith.constant 3.906250e-03 : f32
    %72 = vector.broadcast %cst_29 : f32 to vector<16x1xf32>
    %73 = arith.mulf %69, %72 : vector<16x1xf32>
    %74 = arith.mulf %71, %71 : vector<16x1xf32>
    %75 = arith.subf %73, %74 : vector<16x1xf32>
    %cst_30 = arith.constant 0.000000e+00 : f32
    %76 = vector.broadcast %cst_30 : f32 to vector<16x1xf32>
    %77 = arith.maximumf %75, %76 : vector<16x1xf32>
    %cst_31 = arith.constant 9.99999974E-6 : f32
    %78 = vector.broadcast %cst_31 : f32 to vector<16x1xf32>
    %79 = arith.addf %77, %78 : vector<16x1xf32>
    %80 = math.rsqrt %79 : vector<16x1xf32>
    %81 = vector.broadcast %71 : vector<16x1xf32> to vector<16x256xf32>
    %82 = arith.subf %64, %81 : vector<16x256xf32>
    %83 = vector.broadcast %80 : vector<16x1xf32> to vector<16x256xf32>
    %84 = arith.mulf %82, %83 : vector<16x256xf32>
    %85 = arith.truncf %84 : vector<16x256xf32> to vector<16x256xbf16>
    %c0_32 = arith.constant 0 : index
    %c0_33 = arith.constant 0 : index
    %86 = vector.load %arg6[%c0_32, %c0_33] : memref<256x256xbf16, #tpu.memory_space<vmem>>, vector<256x256xbf16>
    %cst_34 = arith.constant dense<0.000000e+00> : vector<16x256xf32>
    %87 = tpu.matmul %85, %86, %cst_34 {dimension_numbers = #tpu.dot_dimension_numbers<[1], [0], [0], [1], [0, 0, 1, 1], [], []>} : vector<16x256xbf16>, vector<256x256xbf16>, vector<16x256xf32> -> vector<16x256xf32>
    %c0_35 = arith.constant 0 : index
    %c0_36 = arith.constant 0 : index
    %88 = vector.load %arg7[%c0_35, %c0_36] : memref<1x256xf32, #tpu.memory_space<vmem>>, vector<1x256xf32>
    %89 = vector.broadcast %88 : vector<1x256xf32> to vector<16x256xf32>
    %90 = arith.addf %87, %89 : vector<16x256xf32>
    %cst_37 = arith.constant dense<0xFF800000> : vector<16xf32>
    %91 = vector.multi_reduction <maximumf>, %90, %cst_37 [1] : vector<16x256xf32> to vector<16xf32>
    %92 = vector.shape_cast %91 : vector<16xf32> to vector<16x1xf32>
    %93 = vector.broadcast %92 : vector<16x1xf32> to vector<16x256xf32>
    %94 = arith.subf %90, %93 : vector<16x256xf32>
    %95 = math.exp %94 : vector<16x256xf32>
    %cst_38 = arith.constant dense<0.000000e+00> : vector<16xf32>
    %96 = vector.multi_reduction <add>, %95, %cst_38 [1] : vector<16x256xf32> to vector<16xf32>
    %97 = vector.shape_cast %96 : vector<16xf32> to vector<16x1xf32>
    %cst_39 = arith.constant 1.000000e+00 : f32
    %98 = vector.broadcast %cst_39 : f32 to vector<16x1xf32>
    %99 = arith.divf %98, %97 : vector<16x1xf32>
    %100 = vector.broadcast %99 : vector<16x1xf32> to vector<16x256xf32>
    %101 = arith.mulf %95, %100 : vector<16x256xf32>
    %c0_40 = arith.constant 0 : index
    %c0_41 = arith.constant 0 : index
    %102 = vector.load %arg8[%c0_40, %c0_41] : memref<16x256xf32, #tpu.memory_space<vmem>>, vector<16x256xf32>
    tpu.vector_store %arg8[%c0_40, %c0_41], %101 {strides = array<i32>} : memref<16x256xf32, #tpu.memory_space<vmem>>, vector<16x256xf32>,
    return
  }
  func.func @transform_0(%arg0: i32) -> (i32, i32) {
    %c0_i32 = arith.constant 0 : i32
    %c0_i32_0 = arith.constant 0 : i32
    return %arg0, %c0_i32 : i32, i32
  }
  func.func @transform_1(%arg0: i32) -> (i32, i32) {
    %c0_i32 = arith.constant 0 : i32
    %c0_i32_0 = arith.constant 0 : i32
    %c0_i32_1 = arith.constant 0 : i32
    return %c0_i32, %c0_i32_0 : i32, i32
  }
  func.func @transform_2(%arg0: i32) -> (i32, i32) {
    %c0_i32 = arith.constant 0 : i32
    %c0_i32_0 = arith.constant 0 : i32
    %c0_i32_1 = arith.constant 0 : i32
    return %c0_i32, %c0_i32_0 : i32, i32
  }
  func.func @transform_3(%arg0: i32) -> (i32, i32) {
    %c0_i32 = arith.constant 0 : i32
    %c0_i32_0 = arith.constant 0 : i32
    %c0_i32_1 = arith.constant 0 : i32
    return %c0_i32, %c0_i32_0 : i32, i32
  }
  func.func @transform_4(%arg0: i32) -> (i32, i32) {
    %c0_i32 = arith.constant 0 : i32
    %c0_i32_0 = arith.constant 0 : i32
    %c0_i32_1 = arith.constant 0 : i32
    return %c0_i32, %c0_i32_0 : i32, i32
  }
  func.func @transform_5(%arg0: i32) -> (i32, i32) {
    %c0_i32 = arith.constant 0 : i32
    %c0_i32_0 = arith.constant 0 : i32
    %c0_i32_1 = arith.constant 0 : i32
    return %c0_i32, %c0_i32_0 : i32, i32
  }
  func.func @transform_6(%arg0: i32) -> (i32, i32) {
    %c0_i32 = arith.constant 0 : i32
    %c0_i32_0 = arith.constant 0 : i32
    %c0_i32_1 = arith.constant 0 : i32
    return %c0_i32, %c0_i32_0 : i32, i32
  }
  func.func @transform_7(%arg0: i32) -> (i32, i32) {
    %c0_i32 = arith.constant 0 : i32
    %c0_i32_0 = arith.constant 0 : i32
    return %arg0, %c0_i32 : i32, i32
  }
}

</mosaic_0001>

<bundles_post_ra>
// kernel: _decoder_a_impl.1
= control target key start
LH: loop header
LB: loop body
LE: loop exit
PB: predicated region body
PF: predicated region fallthrough
CT: control target
= control target key end

     0   :  { %12 = vsyncpa [#allocation3], 0  ;;  %s2292_s0 = inlined_call_operand.vmem [shape: f32[20,256], index: 0, kind: input, shape index: {}]   ;;  %s2293_s1 = inlined_call_operand.vmem [shape: bf16[256,256], index: 1, kind: input, shape index: {}]   ;;  %s2294_s2 = inlined_call_operand.vmem [shape: f32[1,256], index: 2, kind: input, shape index: {}]   ;;  %s2295_s3 = inlined_call_operand.vmem [shape: bf16[256,256], index: 3, kind: input, shape index: {}]   ;;  %s2296_s4 = inlined_call_operand.vmem [shape: f32[1,256], index: 4, kind: input, shape index: {}]   ;;  %s2297_s5 = inlined_call_operand.vmem [shape: bf16[256,256], index: 5, kind: input, shape index: {}]   ;;  %s2298_s6 = inlined_call_operand.vmem [shape: f32[1,256], index: 6, kind: input, shape index: {}]   ;;  %s2299_s7 = inlined_call_operand.hbm [shape: f32[20,256], index: 7, kind: output, shape index: {}]  }
   0x1   :  { %14 = vsyncpa [#allocation3 + $0x1], 0  ;;  %s1796_s24 = smov 0   ;;  %s1798_s25 = smov 0  }
   0x2   :  { %s1800_s26 = smov 0   ;;  %s1802_s27 = smov 0  }
   0x3 LB: > { %s1817_s28 = sadd.s32 4294967295, %s1751_s27   ;;  %s1338_s29 = sadd.s32 4294967294, %s1751_s27   ;;  %s1751_s27 = sphi %s1802_s27, %s2305_s27   ;;  %s1747_s26 = sphi %s1800_s26, %s2304_s26   ;;  %s1743_s25 = sphi %s1798_s25, %s2303_s25   ;;  %s1739_s24 = sphi %s1796_s24, %s2302_s24  }
   0x4   : > { %s1821_s30 = sadd.s32 1, %s1751_s27   ;;  %s179_s8 = sadd.s32 1, %s1747_s26 }
   0x5   : > { %s176_s9 = ssub.s32 %s1751_s27, %s1821_s30  ;;  %p189_p0 = scmp.ne.s32.totalorder %s1747_s26, %s1743_s25 }
   0x6   : > { %p177_p1 = scmp.eq.s32.totalorder %s176_s9, 0  ;;  %p190_p2 = scmp.eq.s32.totalorder %s1817_s28, 1 }
   0x7   : > { %p195_p3 = scmp.ne.s32.totalorder %s1743_s25, %s1739_s24  ;;  %p196_p4 = scmp.eq.s32.totalorder %s1338_s29, 1 }
   0x8   : > { %s1832_s10 = scalar_select %p177_p1, %s1747_s26, %s179_s8  }
   0x9   : > { %p1834_p5 = por %p190_p2, %p189_p0  ;;  %p1838_p6 = por %p196_p4, %p195_p3 }
   0xa   : > { %p1341_p7 = scmp.ge.s32.totalorder %s1751_s27, 1  ;;  %p252_p8 = scmp.lt.s32.totalorder %s1751_s27, 3 }
   0xc   : > { %p253_p9 = pnand %p1341_p7, %p252_p8 }
   0xd   : > { %s1845_s13 = sshll.u32 (!%p253_p9), %s1817_s28, 1  ;;  %v1505_v0 = vld [vmem:[%s2293_s1 + $0x4] ss:$8 sps:$4 sm:$0xff] (!%p253_p9)   ;;  %v1507_v1 = vld [vmem:[%s2293_s1] ss:$8 sps:$4 sm:$0xff] (!%p253_p9)   ;;  %s287_s22 = sand.u32 (!%p253_p9), 1, %s1743_s25  }
   0xe   : > { %256 = sbr.rel (%p253_p9) target bundleno = 1573 (0x625), region = 48  ;;  %p296_p10 = scmp.lt.s32.totalorder (!%p253_p9), %s1845_s13, 2  ;;  %561 = vmatprep.subr.bf16.mxu0 (!%p253_p9), %v1505_v0  ;;  %v1508_v2 = vld [vmem:[%s2293_s1 + $0x14] ss:$8 sps:$4 sm:$0xff] (!%p253_p9)   ;;  %v1510_v3 = vld [vmem:[%s2293_s1 + $0x10] ss:$8 sps:$4 sm:$0xff] (!%p253_p9)  }
   0xf   : > { %562 = vmatpush1.bf16.msra.mxu0 (!%p253_p9), %v1507_v1  ;;  %v1511_v4 = vld [vmem:[%s2293_s1 + $0x24] ss:$8 sps:$4 sm:$0xff] (!%p253_p9)   ;;  %v1513_v5 = vld [vmem:[%s2293_s1 + $0x20] ss:$8 sps:$4 sm:$0xff] (!%p253_p9)   ;;  %v1514_v14 = vld [vmem:[%s2293_s1 + $0x34] ss:$8 sps:$4 sm:$0xff] (!%p253_p9)  }
  0x10   : > { %563 = vmatprep.subr.bf16.mxu0 (!%p253_p9), %v1508_v2  ;;  %v1516_v18 = vld [vmem:[%s2293_s1 + $0x30] ss:$8 sps:$4 sm:$0xff] (!%p253_p9)   ;;  %v1517_v20 = vld [vmem:[%s2293_s1 + $0x44] ss:$8 sps:$4 sm:$0xff] (!%p253_p9)   ;;  %v1519_v21 = vld [vmem:[%s2293_s1 + $0x40] ss:$8 sps:$4 sm:$0xff] (!%p253_p9)  }
  0x11   : > { %v1520_v22 = vld [vmem:[%s2293_s1 + $0x54] ss:$8 sps:$4 sm:$0xff] (!%p253_p9)   ;;  %v1522_v23 = vld [vmem:[%s2293_s1 + $0x50] ss:$8 sps:$4 sm:$0xff] (!%p253_p9)   ;;  %v1523_v24 = vld [vmem:[%s2293_s1 + $0x64] ss:$8 sps:$4 sm:$0xff] (!%p253_p9)  }
  0x12   : > { %v1525_v25 = vld [vmem:[%s2293_s1 + $0x60] ss:$8 sps:$4 sm:$0xff] (!%p253_p9)   ;;  %v1526_v26 = vld [vmem:[%s2293_s1 + $0x74] ss:$8 sps:$4 sm:$0xff] (!%p253_p9)   ;;  %v1528_v27 = vld [vmem:[%s2293_s1 + $0x70] ss:$8 sps:$4 sm:$0xff] (!%p253_p9)  }
  0x13   : > { %564 = vmatpush1.bf16.msra.mxu0 (!%p253_p9), %v1510_v3  ;;  %v1529_v28 = vld [vmem:[%s2293_s1 + $0x84] ss:$8 sps:$4 sm:$0xff] (!%p253_p9)   ;;  %v1531_v29 = vld [vmem:[%s2293_s1 + $0x80] ss:$8 sps:$4 sm:$0xff] (!%p253_p9)   ;;  %v1532_v30 = vld [vmem:[%s2293_s1 + $0x94] ss:$8 sps:$4 sm:$0xff] (!%p253_p9)  }
  0x14   : > { %565 = vmatprep.subr.bf16.mxu0 (!%p253_p9), %v1511_v4  ;;  %v1534_v31 = vld [vmem:[%s2293_s1 + $0x90] ss:$8 sps:$4 sm:$0xff] (!%p253_p9)   ;;  %v1535_v32 = vld [vmem:[%s2293_s1 + $0xa4] ss:$8 sps:$4 sm:$0xff] (!%p253_p9)   ;;  %v1537_v33 = vld [vmem:[%s2293_s1 + $0xa0] ss:$8 sps:$4 sm:$0xff] (!%p253_p9)  }
  0x15   : > { %s297_s20 = scalar_select %p296_p10, %s1845_s13, 2  ;;  %v1538_v34 = vld [vmem:[%s2293_s1 + $0xb4] ss:$8 sps:$4 sm:$0xff]   ;;  %v1540_v35 = vld [vmem:[%s2293_s1 + $0xb0] ss:$8 sps:$4 sm:$0xff]  }
  0x16   : > { %v1541_v36 = vld [vmem:[%s2293_s1 + $0xc4] ss:$8 sps:$4 sm:$0xff]   ;;  %v1543_v37 = vld [vmem:[%s2293_s1 + $0xc0] ss:$8 sps:$4 sm:$0xff]   ;;  %v1544_v38 = vld [vmem:[%s2293_s1 + $0xd4] ss:$8 sps:$4 sm:$0xff]  }
  0x17   : > { %s1461_s8 = sshll.u32 %s297_s20, 4  ;;  %566 = vmatpush1.bf16.msra.mxu0 %v1513_v5  ;;  %v1546_v39 = vld [vmem:[%s2293_s1 + $0xd0] ss:$8 sps:$4 sm:$0xff]   ;;  %v1547_v40 = vld [vmem:[%s2293_s1 + $0xe4] ss:$8 sps:$4 sm:$0xff]   ;;  %s1342_s23 = sshll.u32 %s287_s22, 5 }
  0x18   : > { %s300_s15 = scalar_lea.vmem %s2292_s0, %s1461_s8  ;;  %567 = vmatprep.subr.bf16.mxu0 %v1514_v14  ;;  %v1549_v41 = vld [vmem:[%s2293_s1 + $0xe0] ss:$8 sps:$4 sm:$0xff]   ;;  %v1550_v42 = vld [vmem:[%s2293_s1 + $0xf4] ss:$8 sps:$4 sm:$0xff]   ;;  %v1552_v43 = vld [vmem:[%s2293_s1 + $0xf0] ss:$8 sps:$4 sm:$0xff]  }
  0x19   : > { %v1870_v6 = vld [vmem:[%s300_s15] sm:$0xff]  ;;  %v1872_v7 = vld [vmem:[%s300_s15 + $0x8] sm:$0xff]  ;;  %v1874_v8 = vld [vmem:[%s300_s15 + $0x10] sm:$0xff]  ;;  %s289_s29 = scalar_lea.vmem [#allocation2], %s1342_s23  ;;  %s2232_s8 = scalar_lea.sflag [#allocation3], %s287_s22 }
  0x1a   : > { %v317_v9 = vadd.f32 %v1872_v7, %v1870_v6  ;;  %v323_v10 = vmul.f32 %v1870_v6, %v1870_v6  ;;  %v324_v11 = vmul.f32 %v1872_v7, %v1872_v7  ;;  %v1882_v12 = vld [vmem:[%s300_s15 + $0x18] sm:$0xff]  ;;  %v325_v13 = vmul.f32 %v1874_v8, %v1874_v8  ;;  %s1263_s9 = ssub.s32 (%p1834_p5), 3, %s1845_s13 }
  0x1b   : > { %v326_v15 = vmul.f32 %v1882_v12, %v1882_v12  ;;  %v320_v17 = vadd.f32 %v1882_v12, %v1874_v8  ;;  %568 = vmatpush1.bf16.msra.mxu0 %v1516_v18  ;;  %v1562_v14 = vld [vmem:[%s2295_s3 + $0x34] ss:$8 sps:$4 sm:$0xff]   ;;  %p1264_p11 = scmp.lt.s32.totalorder (%p1834_p5), %s1263_s9, 2 }
  0x1c   : > { %318 = vadd.xlane.f32.xlu0 %v317_v9  ;;  %v327_v16 = vadd.f32 %v324_v11, %v323_v10  ;;  %569 = vmatprep.subr.bf16.mxu0 %v1517_v20  ;;  %v1553_v11 = vld [vmem:[%s2295_s3 + $0x4] ss:$8 sps:$4 sm:$0xff]   ;;  %v1568_v18 = vld [vmem:[%s2295_s3 + $0x54] ss:$8 sps:$4 sm:$0xff]  }
  0x1d   : > { %v330_v19 = vadd.f32 %v326_v15, %v325_v13  ;;  %868 = vmatprep.subr.bf16.mxu1 %v1553_v11  ;;  %v1561_v13 = vld [vmem:[%s2295_s3 + $0x20] ss:$8 sps:$4 sm:$0xff]   ;;  %v1564_v15 = vld [vmem:[%s2295_s3 + $0x30] ss:$8 sps:$4 sm:$0xff]   ;;  %v1571_v20 = vld [vmem:[%s2295_s3 + $0x64] ss:$8 sps:$4 sm:$0xff]  }
  0x1e   : > { %328 = vadd.xlane.f32.xlu1 %v327_v16  ;;  %v1565_v16 = vld [vmem:[%s2295_s3 + $0x44] ss:$8 sps:$4 sm:$0xff]   ;;  %v1591_v11 = vld [vmem:[%s2295_s3 + $0xc0] ss:$8 sps:$4 sm:$0xff]  }
  0x1f   : > { %570 = vmatpush1.bf16.msra.mxu0 %v1519_v21  ;;  %v1573_v21 = vld [vmem:[%s2295_s3 + $0x60] ss:$8 sps:$4 sm:$0xff]  }
  0x20   : > { %321 = vadd.xlane.f32.xlu0 %v320_v17  ;;  %571 = vmatprep.subr.bf16.mxu0 %v1520_v22  ;;  %v1567_v17 = vld [vmem:[%s2295_s3 + $0x40] ss:$8 sps:$4 sm:$0xff]   ;;  %v1574_v22 = vld [vmem:[%s2295_s3 + $0x74] ss:$8 sps:$4 sm:$0xff]  }
  0x22   : > { %331 = vadd.xlane.f32.xlu1 %v330_v19  ;;  %v1570_v19 = vld [vmem:[%s2295_s3 + $0x50] ss:$8 sps:$4 sm:$0xff]  }
  0x23   : > { %572 = vmatpush1.bf16.msra.mxu0 %v1522_v23  ;;  %v1576_v23 = vld [vmem:[%s2295_s3 + $0x70] ss:$8 sps:$4 sm:$0xff]  }
  0x24   : > { %573 = vmatprep.subr.bf16.mxu0 %v1523_v24  ;;  %v1577_v24 = vld [vmem:[%s2295_s3 + $0x84] ss:$8 sps:$4 sm:$0xff]  }
  0x27   : > { %574 = vmatpush1.bf16.msra.mxu0 %v1525_v25  ;;  %v1579_v25 = vld [vmem:[%s2295_s3 + $0x80] ss:$8 sps:$4 sm:$0xff]  }
  0x28   : > { %575 = vmatprep.subr.bf16.mxu0 %v1526_v26  ;;  %v391_v26 = vlaneseq }
  0x2b   : > { %576 = vmatpush1.bf16.msra.mxu0 %v1528_v27  ;;  %v392_v27 = vshrl.u32 %v391_v26, 7 }
  0x2c   : > { %577 = vmatprep.subr.bf16.mxu0 %v1529_v28 }
  0x2d   : > { %v2026_v28 = vsub.s32 0, %v392_v27 }
  0x2f   : > { %578 = vmatpush1.bf16.msra.mxu0 %v1531_v29  ;;  %v389_v29 = vld [vmem:[%s2294_s2] sm:$0x3] }
  0x30   : > { %579 = vmatprep.subr.bf16.mxu0 %v1532_v30  ;;  %v2031_v30 = vsub.s32 1, %v392_v27 }
  0x33   : > { %580 = vmatpush1.bf16.msra.mxu0 %v1534_v31  ;;  %v394_v31 = vrot.slane %v389_v29, %v2026_v28 }
  0x34   : > { %581 = vmatprep.subr.bf16.mxu0 %v1535_v32  ;;  %v398_v32 = vrot.slane %v389_v29, %v2031_v30 }
  0x37   : > { %582 = vmatpush1.bf16.msra.mxu0 %v1537_v33 }
  0x38   : > { %583 = vmatprep.subr.bf16.mxu0 %v1538_v34 }
  0x3b   : > { %584 = vmatpush1.bf16.msra.mxu0 %v1540_v35 }
  0x3c   : > { %585 = vmatprep.subr.bf16.mxu0 %v1541_v36 }
  0x3f   : > { %586 = vmatpush1.bf16.msra.mxu0 %v1543_v37 }
  0x40   : > { %587 = vmatprep.subr.bf16.mxu0 %v1544_v38 }
  0x43   : > { %588 = vmatpush1.bf16.msra.mxu0 %v1546_v39 }
  0x44   : > { %589 = vmatprep.subr.bf16.mxu0 %v1547_v40 }
  0x47   : > { %590 = vmatpush1.bf16.msra.mxu0 %v1549_v41 }
  0x48   : > { %591 = vmatprep.subr.bf16.mxu0 %v1550_v42 }
  0x4b   : > { %592 = vmatpush1.bf16.msra.mxu0 %v1552_v43 }
  0xa9   : > { %v319_v44 = vpop.xlane.xlu0 %318 }
  0xaa   : > { %v333_v45 = vmul.f32 0.00390625, %v319_v44 }
  0xab   : > { %v329_v46 = vpop.xlane.xlu1 %328 }
  0xac   : > { %v335_v47 = vmul.f32 0.00390625, %v329_v46  ;;  %v337_v48 = vmul.f32 %v333_v45, %v333_v45  ;;  %v347_v61 = vsub.f32 %v1870_v6, %v333_v45  ;;  %v348_v63 = vsub.f32 %v1872_v7, %v333_v45  ;;  %v1555_v6 = vld [vmem:[%s2295_s3] ss:$8 sps:$4 sm:$0xff]   ;;  %v1556_v7 = vld [vmem:[%s2295_s3 + $0x14] ss:$8 sps:$4 sm:$0xff]  }
  0xad   : > { %v322_v49 = vpop.xlane.xlu0 %321  ;;  %869 = vmatpush1.bf16.msra.mxu1 %v1555_v6  ;;  %v1592_v6 = vld [vmem:[%s2295_s3 + $0xd4] ss:$8 sps:$4 sm:$0xff]  }
  0xae   : > { %v339_v50 = vsub.f32 %v335_v47, %v337_v48  ;;  %v334_v51 = vmul.f32 0.00390625, %v322_v49  ;;  %870 = vmatprep.subr.bf16.mxu1 %v1556_v7  ;;  %v1594_v7 = vld [vmem:[%s2295_s3 + $0xd0] ss:$8 sps:$4 sm:$0xff]  }
  0xaf   : > { %v332_v52 = vpop.xlane.xlu1 %331 }
  0xb0   : > { %v341_v53 = vmax.f32 %v339_v50, 0.0  ;;  %v336_v54 = vmul.f32 0.00390625, %v332_v52  ;;  %v338_v55 = vmul.f32 %v334_v51, %v334_v51  ;;  %v349_v62 = vsub.f32 %v1874_v8, %v334_v51  ;;  %v1558_v8 = vld [vmem:[%s2295_s3 + $0x10] ss:$8 sps:$4 sm:$0xff]  }
  0xb1   : > { %v350_v0 = vsub.f32 %v1882_v12, %v334_v51  ;;  %v1559_v12 = vld [vmem:[%s2295_s3 + $0x24] ss:$8 sps:$4 sm:$0xff]   ;;  %871 = vmatpush1.bf16.msra.mxu1 %v1558_v8 }
  0xb2   : > { %v343_v56 = vadd.f32 1e-05, %v341_v53  ;;  %v340_v57 = vsub.f32 %v336_v54, %v338_v55  ;;  %872 = vmatprep.subr.bf16.mxu1 %v1559_v12  ;;  %v1595_v8 = vld [vmem:[%s2295_s3 + $0xe4] ss:$8 sps:$4 sm:$0xff]   ;;  %v1597_v12 = vld [vmem:[%s2295_s3 + $0xe0] ss:$8 sps:$4 sm:$0xff]  }
  0xb4   : > { %v342_v58 = vmax.f32 %v340_v57, 0.0  ;;  %1649 = vrsqrt.f32 %v343_v56 }
  0xb5   : > { %873 = vmatpush1.bf16.msra.mxu1 %v1561_v13  ;;  %v1598_v13 = vld [vmem:[%s2295_s3 + $0xf4] ss:$8 sps:$4 sm:$0xff]  }
  0xb6   : > { %v344_v59 = vadd.f32 1e-05, %v342_v58  ;;  %874 = vmatprep.subr.bf16.mxu1 %v1562_v14  ;;  %v1600_v14 = vld [vmem:[%s2295_s3 + $0xf0] ss:$8 sps:$4 sm:$0xff]  }
  0xb8   : > { %1651 = vrsqrt.f32 %v344_v59 }
  0xb9   : > { %875 = vmatpush1.bf16.msra.mxu1 %v1564_v15 }
  0xba   : > { %876 = vmatprep.subr.bf16.mxu1 %v1565_v16 }
  0xbd   : > { %877 = vmatpush1.bf16.msra.mxu1 %v1567_v17 }
  0xbe   : > { %v1650_v60 = vpop.eup %1649  ;;  %878 = vmatprep.subr.bf16.mxu1 %v1568_v18 }
  0xbf   : > { %v352_v2 = vmul.f32 %v1650_v60, %v348_v63  ;;  %v351_v4 = vmul.f32 %v1650_v60, %v347_v61 }
  0xc1   : > { %879 = vmatpush1.bf16.msra.mxu1 %v1570_v19 }
  0xc2   : > { %v1652_v1 = vpop.eup %1651  ;;  %880 = vmatprep.subr.bf16.mxu1 %v1571_v20 }
  0xc3   : > { %v354_v3 = vmul.f32 %v1652_v1, %v350_v0  ;;  %v353_v5 = vmul.f32 %v1652_v1, %v349_v62  ;;  %v1580_v1 = vld [vmem:[%s2295_s3 + $0x94] ss:$8 sps:$4 sm:$0xff]  }
  0xc5   : > { %v356_v9 = vpack.c.bf16 %v354_v3, %v352_v2  ;;  %v355_v10 = vpack.c.bf16 %v353_v5, %v351_v4  ;;  %881 = vmatpush1.bf16.msra.mxu1 %v1573_v21  ;;  %v1582_v2 = vld [vmem:[%s2295_s3 + $0x90] ss:$8 sps:$4 sm:$0xff]   ;;  %v1583_v3 = vld [vmem:[%s2295_s3 + $0xa4] ss:$8 sps:$4 sm:$0xff]   ;;  %v1585_v4 = vld [vmem:[%s2295_s3 + $0xa0] ss:$8 sps:$4 sm:$0xff]  }
  0xc6   : > { %882 = vmatprep.subr.bf16.mxu1 %v1574_v22  ;;  %v1586_v5 = vld [vmem:[%s2295_s3 + $0xb4] ss:$8 sps:$4 sm:$0xff]  }
  0xc7   : > { %593 = vmatprep.mubr.bf16.mxu0 %v356_v9  ;;  %v1588_v9 = vld [vmem:[%s2295_s3 + $0xb0] ss:$8 sps:$4 sm:$0xff]  }
  0xc8   : > { %594 = vmatmul.mubr.bf16.vlgmr.msra.gmra.mrb[0].mxu0 %v355_v10  ;;  %v1589_v10 = vld [vmem:[%s2295_s3 + $0xc4] ss:$8 sps:$4 sm:$0xff]  }
  0xc9   : > { %883 = vmatpush1.bf16.msra.mxu1 %v1576_v23 }
  0xca   : > { %884 = vmatprep.subr.bf16.mxu1 %v1577_v24 }
  0xcd   : > { %885 = vmatpush1.bf16.msra.mxu1 %v1579_v25 }
  0xce   : > { %886 = vmatprep.subr.bf16.mxu1 %v1580_v1 }
  0xd1   : > { %887 = vmatpush1.bf16.msra.mxu1 %v1582_v2 }
  0xd2   : > { %888 = vmatprep.subr.bf16.mxu1 %v1583_v3 }
  0xd5   : > { %889 = vmatpush1.bf16.msra.mxu1 %v1585_v4 }
  0xd6   : > { %890 = vmatprep.subr.bf16.mxu1 %v1586_v5 }
  0xd9   : > { %891 = vmatpush1.bf16.msra.mxu1 %v1588_v9 }
  0xda   : > { %892 = vmatprep.subr.bf16.mxu1 %v1589_v10 }
  0xdd   : > { %893 = vmatpush1.bf16.msra.mxu1 %v1591_v11 }
  0xde   : > { %894 = vmatprep.subr.bf16.mxu1 %v1592_v6 }
  0xe1   : > { %895 = vmatpush1.bf16.msra.mxu1 %v1594_v7 }
  0xe2   : > { %896 = vmatprep.subr.bf16.mxu1 %v1595_v8 }
  0xe5   : > { %897 = vmatpush1.bf16.msra.mxu1 %v1597_v12 }
  0xe6   : > { %898 = vmatprep.subr.bf16.mxu1 %v1598_v13 }
  0xe9   : > { %899 = vmatpush1.bf16.msra.mxu1 %v1600_v14 }
 0x19b   : > { %v595_v33 = vpop.f32.mrb[0].mxu0 }
 0x19c   : > { %v596_v34 = vadd.f32 %v595_v33, %v394_v31  ;;  %v597_v35 = vpop.f32.mrb[1].mxu0 }
 0x19d   : > { %v598_v36 = vadd.f32 %v597_v35, %v398_v32  ;;  %v599_v37 = vpop.f32.mrb[2].mxu0 }
 0x19e   : > { %v608_v38 = vmul.f32 1.442695, %v596_v34  ;;  %v600_v39 = vadd.f32 %v599_v37, %v394_v31  ;;  %v601_v40 = vpop.f32.mrb[3].mxu0  ;;  %vm604_vm0 = vcmp.gt.f32.partialorder %v596_v34, 0.0 }
 0x19f   : > { %v610_v41 = vmul.f32 1.442695, %v598_v36  ;;  %v602_v42 = vadd.f32 %v601_v40, %v398_v32  ;;  %vm605_vm1 = vcmp.gt.f32.partialorder %v598_v36, 0.0 }
 0x1a0   : > { %1653 = vpow2.f32 %v608_v38  ;;  %v612_v43 = vmul.f32 1.442695, %v600_v39  ;;  %vm606_vm2 = vcmp.gt.f32.partialorder %v600_v39, 0.0 }
 0x1a1   : > { %1655 = vpow2.f32 %v610_v41  ;;  %v614_v44 = vmul.f32 1.442695, %v602_v42  ;;  %vm607_vm3 = vcmp.gt.f32.partialorder %v602_v42, 0.0 }
 0x1a2   : > { %1657 = vpow2.f32 %v612_v43 }
 0x1a3   : > { %1659 = vpow2.f32 %v614_v44 }
 0x1aa   : > { %v1654_v45 = vpop.eup %1653 }
 0x1ab   : > { %v1656_v46 = vpop.eup %1655  ;;  %v1378_v47 = vadd.f32 -1.0, %v1654_v45  ;;  %v1601_v45 = vld [vmem:[%s2297_s5] ss:$8 sps:$4 sm:$0xff]  }
 0x1ac   : > { %v1658_v48 = vpop.eup %1657  ;;  %v1379_v49 = vadd.f32 -1.0, %v1656_v46  ;;  %v1603_v46 = vld [vmem:[%s2297_s5 + $0x4] ss:$8 sps:$4 sm:$0xff]  }
 0x1ad   : > { %v1660_v50 = vpop.eup %1659  ;;  %v2035_v51 = vsel %vm604_vm0, %v596_v34, %v1378_v47  ;;  %v1380_v52 = vadd.f32 -1.0, %v1658_v48  ;;  %v1606_v47 = vld [vmem:[%s2297_s5 + $0x14] ss:$8 sps:$4 sm:$0xff]   ;;  %1175 = vmatprep.subr.bf16.mxu0 %v1603_v46  ;;  %v1604_v48 = vld [vmem:[%s2297_s5 + $0x10] ss:$8 sps:$4 sm:$0xff]  }
 0x1ae   : > { %v2037_v53 = vsel %vm605_vm1, %v598_v36, %v1379_v49  ;;  %v1381_v54 = vadd.f32 -1.0, %v1660_v50  ;;  %v630_v57 = vmul.f32 %v2035_v51, %v2035_v51  ;;  %1176 = vmatpush1.bf16.msra.mxu0 %v1601_v45  ;;  %v1609_v49 = vld [vmem:[%s2297_s5 + $0x24] ss:$8 sps:$4 sm:$0xff]   ;;  %v1607_v50 = vld [vmem:[%s2297_s5 + $0x20] ss:$8 sps:$4 sm:$0xff]  }
 0x1af   : > { %v624_v55 = vadd.f32 %v2037_v53, %v2035_v51  ;;  %v2041_v56 = vsel %vm606_vm2, %v600_v39, %v1380_v52  ;;  %v631_v58 = vmul.f32 %v2037_v53, %v2037_v53  ;;  %1177 = vmatprep.subr.bf16.mxu0 %v1606_v47  ;;  %v1610_v52 = vld [vmem:[%s2297_s5 + $0x30] ss:$8 sps:$4 sm:$0xff]   ;;  %v1645_v46 = vld [vmem:[%s2297_s5 + $0xe4] ss:$8 sps:$4 sm:$0xff]   ;;  %v1643_v47 = vld [vmem:[%s2297_s5 + $0xe0] ss:$8 sps:$4 sm:$0xff]  }
 0x1b0   : > { %v2047_v59 = vsel %vm607_vm3, %v602_v42, %v1381_v54  ;;  %v632_v61 = vmul.f32 %v2041_v56, %v2041_v56  ;;  %v1613_v54 = vld [vmem:[%s2297_s5 + $0x40] ss:$8 sps:$4 sm:$0xff]   ;;  %v1640_v45 = vld [vmem:[%s2297_s5 + $0xd0] ss:$8 sps:$4 sm:$0xff]  }
 0x1b1   : > { %625 = vadd.xlane.f32.xlu0 %v624_v55  ;;  %v627_v60 = vadd.f32 %v2047_v59, %v2041_v56  ;;  %v633_v62 = vmul.f32 %v2047_v59, %v2047_v59  ;;  %v634_v63 = vadd.f32 %v631_v58, %v630_v57  ;;  %v1618_v55 = vld [vmem:[%s2297_s5 + $0x54] ss:$8 sps:$4 sm:$0xff]   ;;  %v1621_v57 = vld [vmem:[%s2297_s5 + $0x64] ss:$8 sps:$4 sm:$0xff]   ;;  %v1619_v58 = vld [vmem:[%s2297_s5 + $0x60] ss:$8 sps:$4 sm:$0xff]  }
 0x1b2   : > { %1178 = vmatpush1.bf16.msra.mxu0 %v1604_v48  ;;  %v1648_v48 = vld [vmem:[%s2297_s5 + $0xf4] ss:$8 sps:$4 sm:$0xff]  }
 0x1b3   : > { %628 = vadd.xlane.f32.xlu1 %v627_v60  ;;  %v637_v0 = vadd.f32 %v633_v62, %v632_v61  ;;  %1179 = vmatprep.subr.bf16.mxu0 %v1609_v49  ;;  %v1622_v60 = vld [vmem:[%s2297_s5 + $0x70] ss:$8 sps:$4 sm:$0xff]   ;;  %v1627_v61 = vld [vmem:[%s2297_s5 + $0x84] ss:$8 sps:$4 sm:$0xff]   ;;  %v1625_v62 = vld [vmem:[%s2297_s5 + $0x80] ss:$8 sps:$4 sm:$0xff]  }
 0x1b4   : > { %v1646_v49 = vld [vmem:[%s2297_s5 + $0xf0] ss:$8 sps:$4 sm:$0xff]  }
 0x1b5   : > { %635 = vadd.xlane.f32.xlu0 %v634_v63  ;;  %v696_v63 = vld [vmem:[%s2296_s4] sm:$0x3] }
 0x1b6   : > { %1180 = vmatpush1.bf16.msra.mxu0 %v1607_v50  ;;  %v705_v1 = vrot.slane %v696_v63, %v2031_v30 }
 0x1b7   : > { %638 = vadd.xlane.f32.xlu1 %v637_v0  ;;  %v701_v0 = vrot.slane %v696_v63, %v2026_v28 }
 0x23e   : > { %v626_v15 = vpop.xlane.xlu0 %625 }
 0x23f   : > { %v640_v16 = vmul.f32 0.00390625, %v626_v15 }
 0x240   : > { %v629_v17 = vpop.xlane.xlu1 %628 }
 0x241   : > { %v641_v18 = vmul.f32 0.00390625, %v629_v17  ;;  %v644_v20 = vmul.f32 %v640_v16, %v640_v16  ;;  %v654_v34 = vsub.f32 %v2035_v51, %v640_v16  ;;  %v655_v36 = vsub.f32 %v2037_v53, %v640_v16  ;;  %v1612_v51 = vld [vmem:[%s2297_s5 + $0x34] ss:$8 sps:$4 sm:$0xff]   ;;  %v1615_v53 = vld [vmem:[%s2297_s5 + $0x44] ss:$8 sps:$4 sm:$0xff]  }
 0x242   : > { %v636_v19 = vpop.xlane.xlu0 %635  ;;  %1181 = vmatprep.subr.bf16.mxu0 %v1612_v51 }
 0x243   : > { %v642_v21 = vmul.f32 0.00390625, %v636_v19  ;;  %v645_v24 = vmul.f32 %v641_v18, %v641_v18  ;;  %v656_v35 = vsub.f32 %v2041_v56, %v641_v18  ;;  %v657_v37 = vsub.f32 %v2047_v59, %v641_v18  ;;  %1182 = vmatpush1.bf16.msra.mxu0 %v1610_v52  ;;  %v1616_v56 = vld [vmem:[%s2297_s5 + $0x50] ss:$8 sps:$4 sm:$0xff]   ;;  %v1624_v59 = vld [vmem:[%s2297_s5 + $0x74] ss:$8 sps:$4 sm:$0xff]  }
 0x244   : > { %v639_v22 = vpop.xlane.xlu1 %638  ;;  %1183 = vmatprep.subr.bf16.mxu0 %v1615_v53 }
 0x245   : > { %v646_v23 = vsub.f32 %v642_v21, %v644_v20  ;;  %v643_v25 = vmul.f32 0.00390625, %v639_v22 }
 0x247   : > { %v648_v26 = vmax.f32 %v646_v23, 0.0  ;;  %v647_v27 = vsub.f32 %v643_v25, %v645_v24  ;;  %1184 = vmatpush1.bf16.msra.mxu0 %v1613_v54 }
 0x248   : > { %1185 = vmatprep.subr.bf16.mxu0 %v1618_v55 }
 0x249   : > { %v650_v29 = vadd.f32 1e-05, %v648_v26  ;;  %v649_v31 = vmax.f32 %v647_v27, 0.0 }
 0x24b   : > { %1661 = vrsqrt.f32 %v650_v29  ;;  %v651_v32 = vadd.f32 1e-05, %v649_v31  ;;  %1186 = vmatpush1.bf16.msra.mxu0 %v1616_v56 }
 0x24c   : > { %1187 = vmatprep.subr.bf16.mxu0 %v1621_v57 }
 0x24d   : > { %1663 = vrsqrt.f32 %v651_v32 }
 0x24f   : > { %1188 = vmatpush1.bf16.msra.mxu0 %v1619_v58 }
 0x250   : > { %1189 = vmatprep.subr.bf16.mxu0 %v1624_v59 }
 0x253   : > { %1190 = vmatpush1.bf16.msra.mxu0 %v1622_v60 }
 0x254   : > { %1191 = vmatprep.subr.bf16.mxu0 %v1627_v61 }
 0x255   : > { %v1662_v33 = vpop.eup %1661 }
 0x256   : > { %v659_v39 = vmul.f32 %v1662_v33, %v655_v36  ;;  %v658_v41 = vmul.f32 %v1662_v33, %v654_v34  ;;  %v1630_v36 = vld [vmem:[%s2297_s5 + $0x94] ss:$8 sps:$4 sm:$0xff]  }
 0x257   : > { %v1664_v38 = vpop.eup %1663  ;;  %1192 = vmatpush1.bf16.msra.mxu0 %v1625_v62 }
 0x258   : > { %v661_v40 = vmul.f32 %v1664_v38, %v657_v37  ;;  %v660_v42 = vmul.f32 %v1664_v38, %v656_v35  ;;  %v1628_v37 = vld [vmem:[%s2297_s5 + $0x90] ss:$8 sps:$4 sm:$0xff]   ;;  %1193 = vmatprep.subr.bf16.mxu0 %v1630_v36  ;;  %v1633_v38 = vld [vmem:[%s2297_s5 + $0xa4] ss:$8 sps:$4 sm:$0xff]  }
 0x25a   : > { %v663_v43 = vpack.c.bf16 %v661_v40, %v659_v39  ;;  %v662_v44 = vpack.c.bf16 %v660_v42, %v658_v41  ;;  %v1631_v39 = vld [vmem:[%s2297_s5 + $0xa0] ss:$8 sps:$4 sm:$0xff]   ;;  %v1636_v40 = vld [vmem:[%s2297_s5 + $0xb4] ss:$8 sps:$4 sm:$0xff]   ;;  %v1634_v41 = vld [vmem:[%s2297_s5 + $0xb0] ss:$8 sps:$4 sm:$0xff]  }
 0x25b   : > { %1194 = vmatpush1.bf16.msra.mxu0 %v1628_v37  ;;  %v1639_v42 = vld [vmem:[%s2297_s5 + $0xc4] ss:$8 sps:$4 sm:$0xff]  }
 0x25c   : > { %900 = vmatprep.mubr.bf16.mxu1 %v663_v43  ;;  %1195 = vmatprep.subr.bf16.mxu0 %v1633_v38  ;;  %v1637_v43 = vld [vmem:[%s2297_s5 + $0xc0] ss:$8 sps:$4 sm:$0xff]  }
 0x25d   : > { %901 = vmatmul.mubr.bf16.vlgmr.msra.gmra.mrb[0].mxu1 %v662_v44  ;;  %v1642_v44 = vld [vmem:[%s2297_s5 + $0xd4] ss:$8 sps:$4 sm:$0xff]  }
 0x25f   : > { %1196 = vmatpush1.bf16.msra.mxu0 %v1631_v39 }
 0x260   : > { %1197 = vmatprep.subr.bf16.mxu0 %v1636_v40 }
 0x263   : > { %1198 = vmatpush1.bf16.msra.mxu0 %v1634_v41 }
 0x264   : > { %1199 = vmatprep.subr.bf16.mxu0 %v1639_v42 }
 0x267   : > { %1200 = vmatpush1.bf16.msra.mxu0 %v1637_v43 }
 0x268   : > { %1201 = vmatprep.subr.bf16.mxu0 %v1642_v44 }
 0x26b   : > { %1202 = vmatpush1.bf16.msra.mxu0 %v1640_v45 }
 0x26c   : > { %1203 = vmatprep.subr.bf16.mxu0 %v1645_v46 }
 0x26f   : > { %1204 = vmatpush1.bf16.msra.mxu0 %v1643_v47 }
 0x270   : > { %1205 = vmatprep.subr.bf16.mxu0 %v1648_v48 }
 0x273   : > { %1206 = vmatpush1.bf16.msra.mxu0 %v1646_v49 }
 0x330   : > { %v902_v2 = vpop.f32.mrb[0].mxu1 }
 0x331   : > { %v903_v3 = vadd.f32 %v902_v2, %v701_v0  ;;  %v904_v4 = vpop.f32.mrb[1].mxu1 }
 0x332   : > { %v905_v5 = vadd.f32 %v904_v4, %v705_v1  ;;  %v906_v9 = vpop.f32.mrb[2].mxu1 }
 0x333   : > { %v915_v10 = vmul.f32 1.442695, %v903_v3  ;;  %v907_v11 = vadd.f32 %v906_v9, %v701_v0  ;;  %v908_v6 = vpop.f32.mrb[3].mxu1  ;;  %vm911_vm4 = vcmp.gt.f32.partialorder %v903_v3, 0.0 }
 0x334   : > { %v917_v7 = vmul.f32 1.442695, %v905_v5  ;;  %v909_v8 = vadd.f32 %v908_v6, %v705_v1  ;;  %vm912_vm5 = vcmp.gt.f32.partialorder %v905_v5, 0.0 }
 0x335   : > { %1665 = vpow2.f32 %v915_v10  ;;  %v919_v12 = vmul.f32 1.442695, %v907_v11  ;;  %vm913_vm6 = vcmp.gt.f32.partialorder %v907_v11, 0.0 }
 0x336   : > { %1667 = vpow2.f32 %v917_v7  ;;  %v921_v13 = vmul.f32 1.442695, %v909_v8  ;;  %vm914_vm7 = vcmp.gt.f32.partialorder %v909_v8, 0.0 }
 0x337   : > { %1669 = vpow2.f32 %v919_v12 }
 0x338   : > { %1671 = vpow2.f32 %v921_v13 }
 0x33f   : > { %v1666_v14 = vpop.eup %1665 }
 0x340   : > { %v1668_v15 = vpop.eup %1667  ;;  %v1414_v16 = vadd.f32 -1.0, %v1666_v14  ;;  %v1003_v14 = vld [vmem:[%s2298_s6] sm:$0x3] }
 0x341   : > { %v1670_v17 = vpop.eup %1669  ;;  %v1415_v18 = vadd.f32 -1.0, %v1668_v15  ;;  %v1008_v15 = vrot.slane %v1003_v14, %v2026_v28 }
 0x342   : > { %v1672_v19 = vpop.eup %1671  ;;  %v2160_v20 = vsel %vm911_vm4, %v903_v3, %v1414_v16  ;;  %v1416_v21 = vadd.f32 -1.0, %v1670_v17  ;;  %v1012_v16 = vrot.slane %v1003_v14, %v2031_v30 }
 0x343   : > { %v2162_v22 = vsel %vm912_vm5, %v905_v5, %v1415_v18  ;;  %v1417_v23 = vadd.f32 -1.0, %v1672_v19  ;;  %v937_v26 = vmul.f32 %v2160_v20, %v2160_v20 }
 0x344   : > { %v931_v24 = vadd.f32 %v2162_v22, %v2160_v20  ;;  %v2166_v25 = vsel %vm913_vm6, %v907_v11, %v1416_v21  ;;  %v938_v27 = vmul.f32 %v2162_v22, %v2162_v22 }
 0x345   : > { %v2172_v29 = vsel %vm914_vm7, %v909_v8, %v1417_v23  ;;  %v939_v32 = vmul.f32 %v2166_v25, %v2166_v25 }
 0x346   : > { %932 = vadd.xlane.f32.xlu0 %v931_v24  ;;  %v934_v31 = vadd.f32 %v2172_v29, %v2166_v25  ;;  %v940_v33 = vmul.f32 %v2172_v29, %v2172_v29  ;;  %v941_v34 = vadd.f32 %v938_v27, %v937_v26 }
 0x348   : > { %935 = vadd.xlane.f32.xlu1 %v934_v31  ;;  %v944_v35 = vadd.f32 %v940_v33, %v939_v32 }
 0x34a   : > { %942 = vadd.xlane.f32.xlu0 %v941_v34 }
 0x34c   : > { %945 = vadd.xlane.f32.xlu1 %v944_v35 }
 0x3d3   : > { %v933_v50 = vpop.xlane.xlu0 %932 }
 0x3d4   : > { %v947_v51 = vmul.f32 0.00390625, %v933_v50 }
 0x3d5   : > { %v936_v52 = vpop.xlane.xlu1 %935 }
 0x3d6   : > { %v948_v53 = vmul.f32 0.00390625, %v936_v52  ;;  %v951_v55 = vmul.f32 %v947_v51, %v947_v51  ;;  %v961_v3 = vsub.f32 %v2160_v20, %v947_v51  ;;  %v962_v4 = vsub.f32 %v2162_v22, %v947_v51 }
 0x3d7   : > { %v943_v54 = vpop.xlane.xlu0 %942 }
 0x3d8   : > { %v949_v56 = vmul.f32 0.00390625, %v943_v54  ;;  %v952_v59 = vmul.f32 %v948_v53, %v948_v53  ;;  %v963_v5 = vsub.f32 %v2166_v25, %v948_v53  ;;  %v964_v9 = vsub.f32 %v2172_v29, %v948_v53 }
 0x3d9   : > { %v946_v57 = vpop.xlane.xlu1 %945 }
 0x3da   : > { %v953_v58 = vsub.f32 %v949_v56, %v951_v55  ;;  %v950_v60 = vmul.f32 0.00390625, %v946_v57 }
 0x3dc   : > { %v955_v61 = vmax.f32 %v953_v58, 0.0  ;;  %v954_v62 = vsub.f32 %v950_v60, %v952_v59 }
 0x3de   : > { %v957_v63 = vadd.f32 1e-05, %v955_v61  ;;  %v956_v0 = vmax.f32 %v954_v62, 0.0 }
 0x3e0   : > { %1673 = vrsqrt.f32 %v957_v63  ;;  %v958_v1 = vadd.f32 1e-05, %v956_v0 }
 0x3e2   : > { %1675 = vrsqrt.f32 %v958_v1 }
 0x3ea   : > { %v1674_v2 = vpop.eup %1673 }
 0x3eb   : > { %v966_v11 = vmul.f32 %v1674_v2, %v962_v4  ;;  %v965_v7 = vmul.f32 %v1674_v2, %v961_v3 }
 0x3ec   : > { %v1676_v10 = vpop.eup %1675 }
 0x3ed   : > { %v968_v6 = vmul.f32 %v1676_v10, %v964_v9  ;;  %v967_v8 = vmul.f32 %v1676_v10, %v963_v5 }
 0x3ef   : > { %v970_v12 = vpack.c.bf16 %v968_v6, %v966_v11  ;;  %v969_v13 = vpack.c.bf16 %v967_v8, %v965_v7 }
 0x3f1   : > { %1207 = vmatprep.mubr.bf16.mxu0 %v970_v12 }
 0x3f2   : > { %1208 = vmatmul.mubr.bf16.vlgmr.msra.gmra.mrb[4].mxu0 %v969_v13 }
 0x4c5   : > { %v1209_v17 = vpop.f32.mrb[4].mxu0 }
 0x4c6   : > { %v1210_v18 = vadd.f32 %v1209_v17, %v1008_v15  ;;  %v1211_v19 = vpop.f32.mrb[5].mxu0 }
 0x4c7   : > { %v1212_v20 = vadd.f32 %v1211_v19, %v1012_v16  ;;  %v1213_v21 = vpop.f32.mrb[6].mxu0 }
 0x4c8   : > { %v1214_v22 = vadd.f32 %v1213_v21, %v1008_v15  ;;  %v1215_v23 = vpop.f32.mrb[7].mxu0 }
 0x4c9   : > { %v1216_v24 = vadd.f32 %v1215_v23, %v1012_v16  ;;  %v1218_v25 = vmax.f32 %v1210_v18, %v1212_v20 }
 0x4cb   : > { %1219 = vmax.xlane.f32.xlu0 %v1218_v25  ;;  %v1221_v26 = vmax.f32 %v1214_v22, %v1216_v24 }
 0x4cd   : > { %1222 = vmax.xlane.f32.xlu1 %v1221_v26 }
 0x558   : > { %v1220_v27 = vpop.xlane.xlu0 %1219 }
 0x559   : > { %v1224_v29 = vsub.f32 %v1210_v18, %v1220_v27  ;;  %v1225_v31 = vsub.f32 %v1212_v20, %v1220_v27 }
 0x55a   : > { %v1223_v32 = vpop.xlane.xlu1 %1222 }
 0x55b   : > { %v1228_v33 = vmul.f32 1.442695, %v1224_v29  ;;  %v1230_v28 = vmul.f32 1.442695, %v1225_v31  ;;  %v1226_v34 = vsub.f32 %v1214_v22, %v1223_v32  ;;  %v1227_v30 = vsub.f32 %v1216_v24, %v1223_v32 }
 0x55d   : > { %1677 = vpow2.f32 %v1228_v33  ;;  %v1232_v35 = vmul.f32 1.442695, %v1226_v34  ;;  %v1234_v36 = vmul.f32 1.442695, %v1227_v30 }
 0x55e   : > { %1679 = vpow2.f32 %v1230_v28 }
 0x55f   : > { %1681 = vpow2.f32 %v1232_v35 }
 0x560   : > { %1683 = vpow2.f32 %v1234_v36 }
 0x567   : > { %v1678_v37 = vpop.eup %1677 }
 0x568   : > { %v1680_v38 = vpop.eup %1679 }
 0x569   : > { %v1682_v39 = vpop.eup %1681  ;;  %v1236_v40 = vadd.f32 %v1680_v38, %v1678_v37 }
 0x56a   : > { %v1684_v41 = vpop.eup %1683 }
 0x56b   : > { %1237 = vadd.xlane.f32.xlu0 %v1236_v40  ;;  %v1239_v42 = vadd.f32 %v1684_v41, %v1682_v39 }
 0x56d   : > { %1240 = vadd.xlane.f32.xlu1 %v1239_v42 }
 0x5f8   : > { %v1238_v43 = vpop.xlane.xlu0 %1237 }
 0x5f9   : > { %1685 = vrcp.f32 %v1238_v43 }
 0x5fa   : > { %v1241_v44 = vpop.xlane.xlu1 %1240 }
 0x5fb   : > { %1687 = vrcp.f32 %v1241_v44 }
 0x602   : > { %1261 = sbr.rel (!%p1834_p5) target bundleno = 1573 (0x625), region = 52 }
 0x603   : > { %v1686_v45 = vpop.eup %1685 }
 0x604   : > { %v1246_v46 = vmul.f32 %v1686_v45, %v1678_v37  ;;  %v1247_v47 = vmul.f32 %v1686_v45, %v1680_v38 }
 0x605   : > { %v1688_v48 = vpop.eup %1687 }
 0x606   : > { %1250 = vst [vmem:[%s289_s29] sm:$0xff] %v1246_v46  ;;  %1251 = vst [vmem:[%s289_s29 + $0x8] sm:$0xff] %v1247_v47  ;;  %v1248_v49 = vmul.f32 %v1688_v48, %v1682_v39  ;;  %v1249_v50 = vmul.f32 %v1688_v48, %v1684_v41 }
 0x608   : > { %1252 = vst [vmem:[%s289_s29 + $0x10] sm:$0xff] %v1248_v49  ;;  %1253 = vst [vmem:[%s289_s29 + $0x18] sm:$0xff] %v1249_v50 }
 0x609   : > { %s2307_s9 = smov (!%p1264_p11, %s1263_s9), 2 }
 0x60a   : > { %s2237_s14 = sshll.u32 %s2307_s9, 8 }
 0x60b   : > { %s1269_s15 = ssub.s32 512, %s2237_s14 }
 0x60c   : > { %1270 = vsyncadd %s2232_s8, %s1269_s15  ;;  %p1454_p12 = scmp.ne.s32.totalorder %s2237_s14, 0  ;;  %s1464_s16 = sshll.u32 %s1817_s28, 9 }
 0x60d   : > { %s2246_s11 = scalar_lea.hbm %s2299_s7, %s1464_s16  ;;  %s1276_s19 = sshll.u32 %s289_s29, 4  ;;  %s2248_s19 = int_to_ptr.vmem [resolvable:$true] %s1276_s19 }
 0x60e   : > { %s1689_s13 = scalar_lea.vmem %s2248_s19, %s2237_s14  ;;  %s1753_s20 = smov [#allocation2]  }
 0x60f   : > { %p1690_p13 = scmp.ne.s32.totalorder %s2248_s19, %s1689_s13  ;;  %s1693_s21 = sshll.u32 %s1753_s20, 4  ;;  %s1694_s21 = int_to_ptr.vmem [resolvable:$false] %s1693_s21 }
 0x610   : > { %s1695_s28 = scalar_lea.vmem %s1694_s21, 1024  ;;  %p1696_p2 = scmp.lt.s32.totalorder %s2248_s19, %s1694_s21 }
 0x611   : > { %p1691_p0 = pnand %p1690_p13, %p1454_p12  ;;  %p1697_p3 = scmp.lt.s32.totalorder %s1695_s28, %s1689_s13 }
 0x613   : > { %p1692_p1 = pneg %p1691_p0  ;;  %p1698_p4 = por %p1697_p3, %p1696_p2 }
 0x615   : > { %p1699_p5 = pnand %p1698_p4, %p1692_p1 }
 0x617   : > { %1702 = shalt.err (!%p1699_p5)
}
 0x618   : > { %s1703_s22 = scalar_lea.hbm %s2246_s11, %s2237_s14  ;;  %s1707_s9 = scalar_lea.hbm %s2299_s7, 768 }
 0x619   : > { %p1704_p7 = scmp.ne.s32.totalorder %s2246_s11, %s1703_s22  ;;  %p1708_p10 = scmp.lt.u32.totalorder %s2246_s11, %s2299_s7 }
 0x61a   : > { %p1709_p11 = scmp.lt.u32.totalorder %s1707_s9, %s1703_s22  ;;  %p1711_p0 = scmp.lt.u32.totalorder %s1703_s22, %s2246_s11 }
 0x61b   : > { %p1705_p8 = pnand %p1704_p7, %p1454_p12 }
 0x61c   : > { %p1710_p13 = por %p1709_p11, %p1708_p10 }
 0x61d   : > { %p1706_p9 = pneg %p1705_p8 }
 0x61e   : > { %p1712_p1 = por %p1711_p0, %p1710_p13 }
 0x620   : > { %p1713_p2 = pnand %p1712_p1, %p1706_p9 }
 0x622   : > { %1716 = shalt.err (!%p1713_p2)
}
 0x623   : > { %s1754_s17 = smov 256   ;;  %s1755_s18 = smov 16  }
 0x624   : > { %1282 = dma.vmem_to_hbm [thread:$0]  (%p1454_p12), %s2248_s19, %s2237_s14, %s2246_s11, %s2232_s8, %s1754_s17, %s1754_s17, %s1755_s18  }
 0x625 PF: > { %p1470_p3 = scmp.ge.s32.totalorder %s1751_s27, 2  ;;  %s1291_s13 = sand.u32 1, %s1739_s24  }
 0x626   : > { %s1292_s20 = scalar_lea.sflag [#allocation3], %s1291_s13 }
 0x627   : > { %p1467_p4 = pnand %p1470_p3, %p1838_p6 }
 0x629   : > { %1734 = dma.done.wait (!%p1467_p4), %s1292_s20, 512  }
 0x62a   : > { %1736 = vsyncadd (!%p1467_p4), %s1292_s20, 4294966784  ;;  %p17_p5 = scmp.ge.s32.totalorder %s1821_s30, 4   ;;  %s2302_s24 = smov %s1743_s25 }
 0x62b   : > { %s2303_s25 = smov %s1747_s26  ;;  %s2304_s26 = smov %s1832_s10 }
 0x62c   : > { %s2305_s27 = smov %s1821_s30  ;;  %19 = sbr.rel (!%p17_p5) target bundleno = 3 (0x3), region = 83 }
 0x633   :  { %1297 = vsyncpa [#allocation3], 1 }
 0x634   :  { %1299 = vsyncpa [#allocation3 + $0x1], 1 }

</bundles_post_ra>
